<compile_context>
chip_gen: v7x
topology: tpu7x:2x2x1
jax: 0.10.0
libtpu: 0.0.40
codegen_flags: <defaults>
</compile_context>

<pallas_src>
import math

import jax
import jax.numpy as jnp
from jax.experimental import pallas as pl
from jax.experimental.pallas import tpu as pltpu

# Logical dims (PyTorch module) and lane-padded dims used by the kernel.
D_IN = 784
D1, D2, D3 = 300, 100, 10
D1P, D2P, D3P = 384, 128, 128


def _round_up(x, m):
    return (x + m - 1) // m * m


def mlp_kernel(x_ref, w1_ref, b1_ref, w2_ref, b2_ref, w3_ref, b3_ref, o_ref):
    # Whole (small) MLP fused per batch tile; weights resident in VMEM.
    x = x_ref[...]                                                     # bf16 (TB, 784)
    h1 = jnp.dot(x, w1_ref[...], preferred_element_type=jnp.float32)   # f32 (TB, 384)
    h1 = jnp.maximum(h1 + b1_ref[...], 0.0).astype(jnp.bfloat16)
    h2 = jnp.dot(h1, w2_ref[...], preferred_element_type=jnp.float32)  # f32 (TB, 128)
    h2 = jnp.maximum(h2 + b2_ref[...], 0.0).astype(jnp.bfloat16)
    h3 = jnp.dot(h2, w3_ref[...], preferred_element_type=jnp.float32)  # f32 (TB, 128)
    o_ref[...] = (h3 + b3_ref[...]).astype(o_ref.dtype)                # lane-dense store


def net_forward(x, kernel_params, *, batch_tile=256):
    """x: (N, 1, 28, 28) or (N, 784) float32. Returns (N, 10) float32."""
    w1, b1, w2, b2, w3, b3 = kernel_params  # padded: bf16 weights, f32 biases

    x2d = x.reshape(-1, D_IN).astype(jnp.bfloat16)   # same as torch .view(-1, 784)
    n = x2d.shape[0]

    # Shrink the tile for tiny batches (keep a multiple of 16 sublanes for
    # bf16 packing), then pad N up to a tile multiple — no divisibility assert.
    bt = min(batch_tile, _round_up(n, 16))
    n_pad = _round_up(n, bt)
    if n_pad != n:
        x2d = jnp.pad(x2d, ((0, n_pad - n), (0, 0)))
    grid = (n_pad // bt,)

    flops = 2 * n_pad * (D_IN * D1P + D1P * D2P + D2P * D3P)
    bytes_accessed = (
        x2d.size * 2                                   # bf16 input
        + (w1.size + w2.size + w3.size) * 2            # bf16 weights
        + (b1.size + b2.size + b3.size) * 4            # f32 biases
        + n_pad * D3P * 4                              # f32 output
    )

    out = pl.pallas_call(
        mlp_kernel,
        out_shape=jax.ShapeDtypeStruct((n_pad, D3P), jnp.float32),
        grid_spec=pltpu.PrefetchScalarGridSpec(
            num_scalar_prefetch=0,
            grid=grid,
            in_specs=[
                pl.BlockSpec((bt, D_IN), lambda i: (i, 0)),   # x tile
                pl.BlockSpec((D_IN, D1P), lambda i: (0, 0)),  # w1 (resident)
                pl.BlockSpec((1, D1P), lambda i: (0, 0)),     # b1
                pl.BlockSpec((D1P, D2P), lambda i: (0, 0)),   # w2
                pl.BlockSpec((1, D2P), lambda i: (0, 0)),     # b2
                pl.BlockSpec((D2P, D3P), lambda i: (0, 0)),   # w3
                pl.BlockSpec((1, D3P), lambda i: (0, 0)),     # b3
            ],
            out_specs=pl.BlockSpec((bt, D3P), lambda i: (i, 0)),
        ),
        compiler_params=pltpu.CompilerParams(
            dimension_semantics=("parallel",),
            vmem_limit_bytes=32 * 1024 * 1024,   # plenty; safe on v7x's 64 MiB VMEM
        ),
        cost_estimate=pl.CostEstimate(
            flops=flops, transcendentals=0, bytes_accessed=bytes_accessed),
    )(x2d, w1, b1, w2, b2, w3, b3)

    return out[:n, :D3]


def init_raw_params(key):
    """Unpadded f32 params, (in, out) layout, mimicking PyTorch nn.Linear
    default init: U(-1/sqrt(fan_in), 1/sqrt(fan_in)) for weight and bias."""
    dims = [(D_IN, D1), (D1, D2), (D2, D3)]
    params = []
    for fan_in, fan_out in dims:
        key, kw, kb = jax.random.split(key, 3)
        bound = 1.0 / math.sqrt(fan_in)
        w = jax.random.uniform(kw, (fan_in, fan_out), jnp.float32, -bound, bound)
        b = jax.random.uniform(kb, (1, fan_out), jnp.float32, -bound, bound)
        params += [w, b]
    return tuple(params)


def prepare_kernel_params(raw_params):
    """Zero-pad to lane multiples and cast weights to bf16 (biases stay f32)."""
    w1, b1, w2, b2, w3, b3 = raw_params

    def pad2(a, rows, cols):
        return jnp.pad(a, ((0, rows - a.shape[0]), (0, cols - a.shape[1])))

    w1p = pad2(w1, D_IN, D1P).astype(jnp.bfloat16)
    b1p = pad2(b1, 1, D1P)
    w2p = pad2(w2, D1P, D2P).astype(jnp.bfloat16)
    b2p = pad2(b2, 1, D2P)
    w3p = pad2(w3, D2P, D3P).astype(jnp.bfloat16)
    b3p = pad2(b3, 1, D3P)
    return (w1p, b1p, w2p, b2p, w3p, b3p)


def reference_forward(x, raw_params):
    w1, b1, w2, b2, w3, b3 = raw_params
    x2d = x.reshape(-1, D_IN)
    h1 = jnp.maximum(x2d @ w1 + b1, 0.0)
    h2 = jnp.maximum(h1 @ w2 + b2, 0.0)
    return h2 @ w3 + b3


if __name__ == "__main__":
    key = jax.random.PRNGKey(0)
    kp, kx = jax.random.split(key)
    raw_params = init_raw_params(kp)
    kernel_params = prepare_kernel_params(raw_params)

    # Small MNIST-like batch: (N, C, H, W) = (8, 1, 28, 28)
    x = jax.random.normal(kx, (8, 1, 28, 28), jnp.float32)

    out = net_forward(x, kernel_params)
    out = jax.block_until_ready(out)

    ref = reference_forward(x, raw_params)
    assert out.shape == (8, 10), out.shape
    # bf16 inputs/weights with f32 accumulation -> loosened tolerance vs f32 ref.
    assert jnp.allclose(out, ref, atol=3e-2, rtol=3e-2), "mismatch vs reference"

    print("KERNEL_OK")
</pallas_src>

<mosaic_0001>
module attributes {stable_mosaic.version = 11 : i64} {
  func.func @mlp_kernel(%arg0: i32, %arg1: memref<16x784xbf16, #tpu.memory_space<vmem>>, %arg2: memref<784x384xbf16, #tpu.memory_space<vmem>>, %arg3: memref<1x384xf32, #tpu.memory_space<vmem>>, %arg4: memref<384x128xbf16, #tpu.memory_space<vmem>>, %arg5: memref<1x128xf32, #tpu.memory_space<vmem>>, %arg6: memref<128x128xbf16, #tpu.memory_space<vmem>>, %arg7: memref<1x128xf32, #tpu.memory_space<vmem>>, %arg8: memref<16x128xf32, #tpu.memory_space<vmem>>) attributes {dimension_semantics = [#tpu.dimension_semantics<parallel>], iteration_bounds = array<i64: 1>, scalar_prefetch = 0 : i64, scratch_operands = 0 : i64, tpu.core_type = #tpu.core_type<tc>, window_params = [{transform_indices = @transform_0, window_bounds = array<i64: 16, 784>}, {pipeline_mode = #tpu.pipeline_mode<synchronous>, transform_indices = @transform_1, window_bounds = array<i64: 784, 384>}, {pipeline_mode = #tpu.pipeline_mode<synchronous>, transform_indices = @transform_2, window_bounds = array<i64: 1, 384>}, {pipeline_mode = #tpu.pipeline_mode<synchronous>, transform_indices = @transform_3, window_bounds = array<i64: 384, 128>}, {pipeline_mode = #tpu.pipeline_mode<synchronous>, transform_indices = @transform_4, window_bounds = array<i64: 1, 128>}, {pipeline_mode = #tpu.pipeline_mode<synchronous>, transform_indices = @transform_5, window_bounds = array<i64: 128, 128>}, {pipeline_mode = #tpu.pipeline_mode<synchronous>, transform_indices = @transform_6, window_bounds = array<i64: 1, 128>}, {transform_indices = @transform_7, window_bounds = array<i64: 16, 128>}]} {
    %c0 = arith.constant 0 : index
    %c0_0 = arith.constant 0 : index
    %0 = vector.load %arg1[%c0, %c0_0] : memref<16x784xbf16, #tpu.memory_space<vmem>>, vector<16x784xbf16>
    %c0_1 = arith.constant 0 : index
    %c0_2 = arith.constant 0 : index
    %1 = vector.load %arg2[%c0_1, %c0_2] : memref<784x384xbf16, #tpu.memory_space<vmem>>, vector<784x384xbf16>
    %cst = arith.constant dense<0.000000e+00> : vector<16x384xf32>
    %2 = tpu.matmul %0, %1, %cst {dimension_numbers = #tpu.dot_dimension_numbers<[1], [0], [0], [1], [0, 0, 1, 1], [], []>} : vector<16x784xbf16>, vector<784x384xbf16>, vector<16x384xf32> -> vector<16x384xf32>
    %c0_3 = arith.constant 0 : index
    %c0_4 = arith.constant 0 : index
    %3 = vector.load %arg3[%c0_3, %c0_4] : memref<1x384xf32, #tpu.memory_space<vmem>>, vector<1x384xf32>
    %4 = vector.broadcast %3 : vector<1x384xf32> to vector<16x384xf32>
    %5 = arith.addf %2, %4 : vector<16x384xf32>
    %cst_5 = arith.constant 0.000000e+00 : f32
    %6 = vector.broadcast %cst_5 : f32 to vector<16x384xf32>
    %7 = arith.maximumf %5, %6 : vector<16x384xf32>
    %8 = arith.truncf %7 : vector<16x384xf32> to vector<16x384xbf16>
    %c0_6 = arith.constant 0 : index
    %c0_7 = arith.constant 0 : index
    %9 = vector.load %arg4[%c0_6, %c0_7] : memref<384x128xbf16, #tpu.memory_space<vmem>>, vector<384x128xbf16>
    %cst_8 = arith.constant dense<0.000000e+00> : vector<16x128xf32>
    %10 = tpu.matmul %8, %9, %cst_8 {dimension_numbers = #tpu.dot_dimension_numbers<[1], [0], [0], [1], [0, 0, 1, 1], [], []>} : vector<16x384xbf16>, vector<384x128xbf16>, vector<16x128xf32> -> vector<16x128xf32>
    %c0_9 = arith.constant 0 : index
    %c0_10 = arith.constant 0 : index
    %11 = vector.load %arg5[%c0_9, %c0_10] : memref<1x128xf32, #tpu.memory_space<vmem>>, vector<1x128xf32>
    %12 = vector.broadcast %11 : vector<1x128xf32> to vector<16x128xf32>
    %13 = arith.addf %10, %12 : vector<16x128xf32>
    %cst_11 = arith.constant 0.000000e+00 : f32
    %14 = vector.broadcast %cst_11 : f32 to vector<16x128xf32>
    %15 = arith.maximumf %13, %14 : vector<16x128xf32>
    %16 = arith.truncf %15 : vector<16x128xf32> to vector<16x128xbf16>
    %c0_12 = arith.constant 0 : index
    %c0_13 = arith.constant 0 : index
    %17 = vector.load %arg6[%c0_12, %c0_13] : memref<128x128xbf16, #tpu.memory_space<vmem>>, vector<128x128xbf16>
    %cst_14 = arith.constant dense<0.000000e+00> : vector<16x128xf32>
    %18 = tpu.matmul %16, %17, %cst_14 {dimension_numbers = #tpu.dot_dimension_numbers<[1], [0], [0], [1], [0, 0, 1, 1], [], []>} : vector<16x128xbf16>, vector<128x128xbf16>, vector<16x128xf32> -> vector<16x128xf32>
    %c0_15 = arith.constant 0 : index
    %c0_16 = arith.constant 0 : index
    %19 = vector.load %arg7[%c0_15, %c0_16] : memref<1x128xf32, #tpu.memory_space<vmem>>, vector<1x128xf32>
    %20 = vector.broadcast %19 : vector<1x128xf32> to vector<16x128xf32>
    %21 = arith.addf %18, %20 : vector<16x128xf32>
    %c0_17 = arith.constant 0 : index
    %c0_18 = arith.constant 0 : index
    %22 = vector.load %arg8[%c0_17, %c0_18] : memref<16x128xf32, #tpu.memory_space<vmem>>, vector<16x128xf32>
    tpu.vector_store %arg8[%c0_17, %c0_18], %21 {strides = array<i32>} : memref<16x128xf32, #tpu.memory_space<vmem>>, vector<16x128xf32>,
    return
  }
  func.func @transform_0(%arg0: i32) -> (i32, i32) {
    %c0_i32 = arith.constant 0 : i32
    %c0_i32_0 = arith.constant 0 : i32
    return %arg0, %c0_i32 : i32, i32
  }
  func.func @transform_1(%arg0: i32) -> (i32, i32) {
    %c0_i32 = arith.constant 0 : i32
    %c0_i32_0 = arith.constant 0 : i32
    %c0_i32_1 = arith.constant 0 : i32
    return %c0_i32, %c0_i32_0 : i32, i32
  }
  func.func @transform_2(%arg0: i32) -> (i32, i32) {
    %c0_i32 = arith.constant 0 : i32
    %c0_i32_0 = arith.constant 0 : i32
    %c0_i32_1 = arith.constant 0 : i32
    return %c0_i32, %c0_i32_0 : i32, i32
  }
  func.func @transform_3(%arg0: i32) -> (i32, i32) {
    %c0_i32 = arith.constant 0 : i32
    %c0_i32_0 = arith.constant 0 : i32
    %c0_i32_1 = arith.constant 0 : i32
    return %c0_i32, %c0_i32_0 : i32, i32
  }
  func.func @transform_4(%arg0: i32) -> (i32, i32) {
    %c0_i32 = arith.constant 0 : i32
    %c0_i32_0 = arith.constant 0 : i32
    %c0_i32_1 = arith.constant 0 : i32
    return %c0_i32, %c0_i32_0 : i32, i32
  }
  func.func @transform_5(%arg0: i32) -> (i32, i32) {
    %c0_i32 = arith.constant 0 : i32
    %c0_i32_0 = arith.constant 0 : i32
    %c0_i32_1 = arith.constant 0 : i32
    return %c0_i32, %c0_i32_0 : i32, i32
  }
  func.func @transform_6(%arg0: i32) -> (i32, i32) {
    %c0_i32 = arith.constant 0 : i32
    %c0_i32_0 = arith.constant 0 : i32
    %c0_i32_1 = arith.constant 0 : i32
    return %c0_i32, %c0_i32_0 : i32, i32
  }
  func.func @transform_7(%arg0: i32) -> (i32, i32) {
    %c0_i32 = arith.constant 0 : i32
    %c0_i32_0 = arith.constant 0 : i32
    return %arg0, %c0_i32 : i32, i32
  }
}

</mosaic_0001>

<bundles_post_ra>
// kernel: tpu_custom_call.1
= control target key start
LH: loop header
LB: loop body
LE: loop exit
PB: predicated region body
PF: predicated region fallthrough
CT: control target
= control target key end

     0   :  { %12 = vsyncpa [#allocation3], 0  ;;  %s2783_s0 = inlined_call_operand.hbm [shape: bf16[16,784], index: 0, kind: input, shape index: {}]   ;;  %s2784_s1 = inlined_call_operand.hbm [shape: bf16[784,384], index: 1, kind: input, shape index: {}]   ;;  %s2785_s2 = inlined_call_operand.vmem [shape: f32[1,384], index: 2, kind: input, shape index: {}]   ;;  %s2786_s3 = inlined_call_operand.hbm [shape: bf16[384,128], index: 3, kind: input, shape index: {}]   ;;  %s2787_s4 = inlined_call_operand.vmem [shape: f32[1,128], index: 4, kind: input, shape index: {}]   ;;  %s2788_s5 = inlined_call_operand.hbm [shape: bf16[128,128], index: 5, kind: input, shape index: {}]   ;;  %s2789_s6 = inlined_call_operand.vmem [shape: f32[1,128], index: 6, kind: input, shape index: {}]   ;;  %s2790_s7 = inlined_call_operand.hbm [shape: f32[16,128], index: 7, kind: output, shape index: {}]  }
   0x1   :  { %13 = vsyncpa [#allocation6], 0 }
   0x2   :  { %14 = vsyncpa [#allocation9], 0 }
   0x3   :  { %15 = vsyncpa [#allocation4], 0  ;;  %s2621_s24 = smov [#allocation5]   ;;  %s2503_s28 = scalar_lea.hbm %s2784_s1, 18816 }
   0x4   :  { %s33_s25 = sshll.u32 %s2621_s24, 4  ;;  %p2504_p0 = scmp.ne.s32.totalorder %s2784_s1, %s2503_s28  ;;  %s34_s25 = int_to_ptr.vmem [resolvable:$true] %s33_s25 }
   0x5   :  { %p2507_p1 = scmp.lt.u32.totalorder %s2503_s28, %s2784_s1 }
   0x7   :  { %p2509_p2 = pnand %p2507_p1, %p2504_p0 }
   0x9   :  { %2512 = shalt.err (!%p2509_p2)
}
   0xa   :  { %s2513_s10 = scalar_lea.vmem %s34_s25, 18816  ;;  %p2518_p4 = scmp.lt.s32.totalorder %s34_s25, %s34_s25 }
   0xb   :  { %p2514_p3 = scmp.ne.s32.totalorder %s34_s25, %s2513_s10  ;;  %p2519_p5 = scmp.lt.s32.totalorder %s2513_s10, %s2513_s10 }
   0xd   :  { %p2520_p6 = por %p2519_p5, %p2518_p4 }
   0xf   :  { %p2521_p7 = pnand %p2520_p6, %p2514_p3 }
  0x11   :  { %2524 = shalt.err (!%p2521_p7)
}
  0x12   :  { %s2622_s11 = smov 192   ;;  %s2623_s12 = smov 12  }
  0x13   :  { %39 = dma.hbm_to_vmem [thread:$0]  %s2784_s1, 18816, %s34_s25, [#allocation6], %s2622_s11, %s2622_s11, %s2623_s12  }
  0x14   :  { %s2624_s15 = smov [#allocation2]   ;;  %s2525_s19 = scalar_lea.hbm %s2783_s0, 896 }
  0x15   :  { %s21_s16 = sshll.u32 %s2624_s15, 4  ;;  %p2526_p8 = scmp.ne.s32.totalorder %s2783_s0, %s2525_s19  ;;  %s22_s16 = int_to_ptr.vmem [resolvable:$true] %s21_s16 }
  0x16   :  { %p2529_p9 = scmp.lt.u32.totalorder %s2525_s19, %s2783_s0 }
  0x18   :  { %p2531_p10 = pnand %p2529_p9, %p2526_p8 }
  0x1a   :  { %2534 = shalt.err (!%p2531_p10)
}
  0x1b   :  { %s2535_s24 = scalar_lea.vmem %s22_s16, 896  ;;  %p2540_p12 = scmp.lt.s32.totalorder %s22_s16, %s22_s16 }
  0x1c   :  { %p2536_p11 = scmp.ne.s32.totalorder %s22_s16, %s2535_s24  ;;  %p2541_p13 = scmp.lt.s32.totalorder %s2535_s24, %s2535_s24 }
  0x1e   :  { %p2542_p0 = por %p2541_p13, %p2540_p12 }
  0x20   :  { %p2543_p1 = pnand %p2542_p0, %p2536_p11 }
  0x22   :  { %2546 = shalt.err (!%p2543_p1)
}
  0x23   :  { %s2625_s1 = smov 448   ;;  %s2626_s25 = smov 28  }
  0x24   :  { %27 = dma.hbm_to_vmem [thread:$0]  %s2783_s0, 896, %s22_s16, [#allocation3], %s2625_s1, %s2625_s1, %s2626_s25  }
  0x25   :  { %s2627_s28 = smov [#allocation7]   ;;  %s2547_s9 = scalar_lea.hbm %s2786_s3, 3072 }
  0x26   :  { %s47_s29 = sshll.u32 %s2627_s28, 4  ;;  %p2548_p2 = scmp.ne.s32.totalorder %s2786_s3, %s2547_s9  ;;  %s48_s29 = int_to_ptr.vmem [resolvable:$true] %s47_s29 }
  0x27   :  { %p2551_p3 = scmp.lt.u32.totalorder %s2547_s9, %s2786_s3 }
  0x29   :  { %p2553_p4 = pnand %p2551_p3, %p2548_p2 }
  0x2b   :  { %2556 = shalt.err (!%p2553_p4)
}
  0x2c   :  { %s2557_s14 = scalar_lea.vmem %s48_s29, 3072  ;;  %p2562_p6 = scmp.lt.s32.totalorder %s48_s29, %s48_s29 }
  0x2d   :  { %p2558_p5 = scmp.ne.s32.totalorder %s48_s29, %s2557_s14  ;;  %p2563_p7 = scmp.lt.s32.totalorder %s2557_s14, %s2557_s14 }
  0x2f   :  { %p2564_p8 = por %p2563_p7, %p2562_p6 }
  0x31   :  { %p2565_p9 = pnand %p2564_p8, %p2558_p5 }
  0x33   :  { %2568 = shalt.err (!%p2565_p9)
}
  0x34   :  { %s2628_s0 = smov 64   ;;  %s2629_s15 = smov 4  }
  0x35   :  { %53 = dma.hbm_to_vmem [thread:$0]  %s2786_s3, 3072, %s48_s29, [#allocation6], %s2628_s0, %s2628_s0, %s2629_s15  }
  0x36   :  { %s2630_s18 = smov [#allocation8]   ;;  %s2569_s22 = scalar_lea.hbm %s2788_s5, 1024 }
  0x37   :  { %s61_s19 = sshll.u32 %s2630_s18, 4  ;;  %p2570_p10 = scmp.ne.s32.totalorder %s2788_s5, %s2569_s22  ;;  %s62_s19 = int_to_ptr.vmem [resolvable:$true] %s61_s19 }
  0x38   :  { %p2573_p11 = scmp.lt.u32.totalorder %s2569_s22, %s2788_s5 }
  0x3a   :  { %p2575_p12 = pnand %p2573_p11, %p2570_p10 }
  0x3c   :  { %2578 = shalt.err (!%p2575_p12)
}
  0x3d   :  { %s2579_s26 = scalar_lea.vmem %s62_s19, 1024  ;;  %p2584_p0 = scmp.lt.s32.totalorder %s62_s19, %s62_s19 }
  0x3e   :  { %p2580_p13 = scmp.ne.s32.totalorder %s62_s19, %s2579_s26  ;;  %p2585_p1 = scmp.lt.s32.totalorder %s2579_s26, %s2579_s26 }
  0x40   :  { %p2586_p2 = por %p2585_p1, %p2584_p0 }
  0x42   :  { %p2587_p3 = pnand %p2586_p2, %p2580_p13 }
  0x44   :  { %2590 = shalt.err (!%p2587_p3)
}
  0x45   :  { %67 = dma.hbm_to_vmem [thread:$0]  %s2788_s5, 1024, %s62_s19, [#allocation9], %s2628_s0, %s2628_s0, %s2629_s15  }
  0x46   :  { %2613 = dma.done.wait [#allocation3], 896  }
  0x47   :  { %2614 = vsyncadd [#allocation3], 4294966400 }
  0x48   :  { %2615 = dma.done.wait [#allocation6], 21888  }
  0x49   :  { %2616 = vsyncadd [#allocation6], 4294945408 }
  0x4a   :  { %2617 = dma.done.wait [#allocation9], 1024  }
  0x4b   :  { %2618 = vsyncadd [#allocation9], 4294966272  ;;  %v2265_v0 = vld [vmem:[#allocation5 + $0x4] ss:$12 sps:$4 sm:$0xff]   ;;  %v2267_v1 = vld [vmem:[#allocation5] ss:$12 sps:$4 sm:$0xff]  }
  0x4c   :  { %1127 = vmatprep.subr.bf16.mxu0 %v2265_v0  ;;  %v2268_v2 = vld [vmem:[#allocation5 + $0x1c] ss:$12 sps:$4 sm:$0xff]   ;;  %v2270_v3 = vld [vmem:[#allocation5 + $0x18] ss:$12 sps:$4 sm:$0xff]   ;;  %v2271_v4 = vld [vmem:[#allocation5 + $0x34] ss:$12 sps:$4 sm:$0xff]  }
  0x4d   :  { %1128 = vmatpush1.bf16.msra.mxu0 %v2267_v1  ;;  %v2273_v5 = vld [vmem:[#allocation5 + $0x30] ss:$12 sps:$4 sm:$0xff]   ;;  %v2274_v6 = vld [vmem:[#allocation5 + $0x4c] ss:$12 sps:$4 sm:$0xff]   ;;  %v2276_v7 = vld [vmem:[#allocation5 + $0x48] ss:$12 sps:$4 sm:$0xff]  }
  0x4e   :  { %1129 = vmatprep.subr.bf16.mxu0 %v2268_v2  ;;  %v2277_v8 = vld [vmem:[#allocation5 + $0x64] ss:$12 sps:$4 sm:$0xff]   ;;  %v2279_v9 = vld [vmem:[#allocation5 + $0x60] ss:$12 sps:$4 sm:$0xff]   ;;  %v2280_v10 = vld [vmem:[#allocation5 + $0x7c] ss:$12 sps:$4 sm:$0xff]  }
  0x4f   :  { %v2282_v11 = vld [vmem:[#allocation5 + $0x78] ss:$12 sps:$4 sm:$0xff]   ;;  %v2283_v12 = vld [vmem:[#allocation5 + $0x94] ss:$12 sps:$4 sm:$0xff]   ;;  %v2315_v13 = vld [vmem:[#allocation2 + $0x4] ss:$28 sps:$4 sm:$0xff]  }
  0x50   :  { %v2285_v14 = vld [vmem:[#allocation5 + $0x90] ss:$12 sps:$4 sm:$0xff]   ;;  %v2286_v15 = vld [vmem:[#allocation5 + $0xac] ss:$12 sps:$4 sm:$0xff]   ;;  %1159 = vmatprep.mubr.bf16.mxu0 %v2315_v13  ;;  %v2288_v16 = vld [vmem:[#allocation5 + $0xa8] ss:$12 sps:$4 sm:$0xff]   ;;  %1331 = vmatprep.mubr.bf16.mxu1 %v2315_v13 }
  0x51   :  { %1130 = vmatpush1.bf16.msra.mxu0 %v2270_v3  ;;  %v2322_v17 = vld [vmem:[#allocation5 + $0xc8] ss:$12 sps:$4 sm:$0xff]   ;;  %v2289_v19 = vld [vmem:[#allocation5 + $0xc4] ss:$12 sps:$4 sm:$0xff]   ;;  %v2327_v20 = vld [vmem:[#allocation5 + $0xe0] ss:$12 sps:$4 sm:$0xff]  }
  0x52   :  { %1131 = vmatprep.subr.bf16.mxu0 %v2271_v4  ;;  %v2323_v18 = vld [vmem:[#allocation5 + $0x8] ss:$12 sps:$4 sm:$0xff]   ;;  %2079 = vmatprep.subr.bf16.mxu1 %v2322_v17  ;;  %v2328_v21 = vld [vmem:[#allocation5 + $0x20] ss:$12 sps:$4 sm:$0xff]   ;;  %v2332_v24 = vld [vmem:[#allocation5 + $0xf8] ss:$12 sps:$4 sm:$0xff]  }
  0x53   :  { %2080 = vmatpush3.bf16.msra.mxu1 %v2323_v18  ;;  %v2291_v22 = vld [vmem:[#allocation5 + $0xc0] ss:$12 sps:$4 sm:$0xff]   ;;  %v2292_v23 = vld [vmem:[#allocation5 + $0xdc] ss:$12 sps:$4 sm:$0xff]   ;;  %v2333_v25 = vld [vmem:[#allocation5 + $0x38] ss:$12 sps:$4 sm:$0xff]  }
  0x54   :  { %2081 = vmatprep.subr.bf16.mxu1 %v2327_v20  ;;  %v2294_v26 = vld [vmem:[#allocation5 + $0xd8] ss:$12 sps:$4 sm:$0xff]   ;;  %v2295_v27 = vld [vmem:[#allocation5 + $0xf4] ss:$12 sps:$4 sm:$0xff]   ;;  %v2337_v28 = vld [vmem:[#allocation5 + $0x110] ss:$12 sps:$4 sm:$0xff]  }
  0x55   :  { %1132 = vmatpush1.bf16.msra.mxu0 %v2273_v5  ;;  %v2338_v29 = vld [vmem:[#allocation5 + $0x50] ss:$12 sps:$4 sm:$0xff]   ;;  %v2342_v31 = vld [vmem:[#allocation5 + $0x128] ss:$12 sps:$4 sm:$0xff]   ;;  %v2298_v32 = vld [vmem:[#allocation5 + $0x10c] ss:$12 sps:$4 sm:$0xff]  }
  0x56   :  { %1133 = vmatprep.subr.bf16.mxu0 %v2274_v6  ;;  %v2297_v30 = vld [vmem:[#allocation5 + $0xf0] ss:$12 sps:$4 sm:$0xff]   ;;  %v2343_v33 = vld [vmem:[#allocation5 + $0x68] ss:$12 sps:$4 sm:$0xff]   ;;  %v2347_v34 = vld [vmem:[#allocation5 + $0x140] ss:$12 sps:$4 sm:$0xff]  }
  0x57   :  { %2082 = vmatpush3.bf16.msra.mxu1 %v2328_v21  ;;  %v2300_v35 = vld [vmem:[#allocation5 + $0x108] ss:$12 sps:$4 sm:$0xff]   ;;  %v2301_v36 = vld [vmem:[#allocation5 + $0x124] ss:$12 sps:$4 sm:$0xff]   ;;  %v2348_v37 = vld [vmem:[#allocation5 + $0x80] ss:$12 sps:$4 sm:$0xff]  }
  0x58   :  { %2083 = vmatprep.subr.bf16.mxu1 %v2332_v24  ;;  %v2352_v38 = vld [vmem:[#allocation5 + $0x158] ss:$12 sps:$4 sm:$0xff]   ;;  %v2303_v39 = vld [vmem:[#allocation5 + $0x120] ss:$12 sps:$4 sm:$0xff]   ;;  %v2304_v40 = vld [vmem:[#allocation5 + $0x13c] ss:$12 sps:$4 sm:$0xff]  }
  0x59   :  { %1134 = vmatpush1.bf16.msra.mxu0 %v2276_v7  ;;  %v2353_v41 = vld [vmem:[#allocation5 + $0x98] ss:$12 sps:$4 sm:$0xff]   ;;  %v2357_v42 = vld [vmem:[#allocation5 + $0x170] ss:$12 sps:$4 sm:$0xff]   ;;  %v2307_v44 = vld [vmem:[#allocation5 + $0x154] ss:$12 sps:$4 sm:$0xff]  }
  0x5a   :  { %1135 = vmatprep.subr.bf16.mxu0 %v2277_v8  ;;  %v2306_v43 = vld [vmem:[#allocation5 + $0x138] ss:$12 sps:$4 sm:$0xff]   ;;  %v2358_v45 = vld [vmem:[#allocation5 + $0xb0] ss:$12 sps:$4 sm:$0xff]   ;;  %v2362_v46 = vld [vmem:[#allocation5 + $0x248] ss:$12 sps:$4 sm:$0xff]  }
  0x5b   :  { %2084 = vmatpush3.bf16.msra.mxu1 %v2333_v25  ;;  %v2309_v47 = vld [vmem:[#allocation5 + $0x150] ss:$12 sps:$4 sm:$0xff]   ;;  %v2310_v48 = vld [vmem:[#allocation5 + $0x16c] ss:$12 sps:$4 sm:$0xff]   ;;  %v2363_v49 = vld [vmem:[#allocation5 + $0x188] ss:$12 sps:$4 sm:$0xff]  }
  0x5c   :  { %2085 = vmatprep.subr.bf16.mxu1 %v2337_v28  ;;  %v2313_v50 = vld [vmem:[#allocation2] ss:$28 sps:$4 sm:$0xff]   ;;  %v2367_v51 = vld [vmem:[#allocation5 + $0x260] ss:$12 sps:$4 sm:$0xff]   ;;  %v2377_v59 = vld [vmem:[#allocation5 + $0x290] ss:$12 sps:$4 sm:$0xff]  }
  0x5d   :  { %1136 = vmatpush1.bf16.msra.mxu0 %v2279_v9  ;;  %v2312_v52 = vld [vmem:[#allocation5 + $0x168] ss:$12 sps:$4 sm:$0xff]   ;;  %v2318_v53 = vld [vmem:[#allocation5 + $0x184] ss:$12 sps:$4 sm:$0xff]   ;;  %v2368_v54 = vld [vmem:[#allocation5 + $0x1a0] ss:$12 sps:$4 sm:$0xff]  }
  0x5e   :  { %1137 = vmatprep.subr.bf16.mxu0 %v2280_v10  ;;  %v2372_v55 = vld [vmem:[#allocation5 + $0x278] ss:$12 sps:$4 sm:$0xff]   ;;  %v2316_v56 = vld [vmem:[#allocation5 + $0x180] ss:$12 sps:$4 sm:$0xff]   ;;  %v2321_v57 = vld [vmem:[#allocation5 + $0x19c] ss:$12 sps:$4 sm:$0xff]  }
  0x5f   :  { %2086 = vmatpush3.bf16.msra.mxu1 %v2338_v29  ;;  %v2373_v58 = vld [vmem:[#allocation5 + $0x1b8] ss:$12 sps:$4 sm:$0xff]   ;;  %v2326_v61 = vld [vmem:[#allocation5 + $0x1b4] ss:$12 sps:$4 sm:$0xff]   ;;  %v2378_v62 = vld [vmem:[#allocation5 + $0x1d0] ss:$12 sps:$4 sm:$0xff]  }
  0x60   :  { %2087 = vmatprep.subr.bf16.mxu1 %v2342_v31  ;;  %v2319_v60 = vld [vmem:[#allocation5 + $0x198] ss:$12 sps:$4 sm:$0xff]   ;;  %v2382_v63 = vld [vmem:[#allocation5 + $0x2a8] ss:$12 sps:$4 sm:$0xff]   ;;  %v2324_v0 = vld [vmem:[#allocation5 + $0x1b0] ss:$12 sps:$4 sm:$0xff]  }
  0x61   :  { %1138 = vmatpush1.bf16.msra.mxu0 %v2282_v11  ;;  %v2331_v1 = vld [vmem:[#allocation5 + $0x1cc] ss:$12 sps:$4 sm:$0xff]   ;;  %v2329_v2 = vld [vmem:[#allocation5 + $0x1c8] ss:$12 sps:$4 sm:$0xff]   ;;  %v2336_v6 = vld [vmem:[#allocation5 + $0x1e4] ss:$12 sps:$4 sm:$0xff]  }
  0x62   :  { %1139 = vmatprep.subr.bf16.mxu0 %v2283_v12  ;;  %v2383_v3 = vld [vmem:[#allocation5 + $0x1e8] ss:$12 sps:$4 sm:$0xff]   ;;  %v2387_v4 = vld [vmem:[#allocation5 + $0x2c0] ss:$12 sps:$4 sm:$0xff]   ;;  %v2392_v8 = vld [vmem:[#allocation5 + $0x2d8] ss:$12 sps:$4 sm:$0xff]  }
  0x63   :  { %2088 = vmatpush3.bf16.msra.mxu1 %v2343_v33  ;;  %v2396_v5 = vld [vmem:[#allocation2 + $0xc] ss:$28 sps:$4 sm:$0xff]   ;;  %v2388_v7 = vld [vmem:[#allocation5 + $0x200] ss:$12 sps:$4 sm:$0xff]   ;;  %v2341_v10 = vld [vmem:[#allocation5 + $0x1fc] ss:$12 sps:$4 sm:$0xff]  }
  0x64   :  { %2089 = vmatprep.subr.bf16.mxu1 %v2347_v34  ;;  %v2334_v9 = vld [vmem:[#allocation5 + $0x1e0] ss:$12 sps:$4 sm:$0xff]   ;;  %v2393_v11 = vld [vmem:[#allocation5 + $0x218] ss:$12 sps:$4 sm:$0xff]   ;;  %v2400_v12 = vld [vmem:[#allocation5 + $0x2f0] ss:$12 sps:$4 sm:$0xff]  }
  0x65   :  { %1140 = vmatpush1.bf16.msra.mxu0 %v2285_v14  ;;  %v2339_v13 = vld [vmem:[#allocation5 + $0x1f8] ss:$12 sps:$4 sm:$0xff]   ;;  %v2346_v14 = vld [vmem:[#allocation5 + $0x214] ss:$12 sps:$4 sm:$0xff]   ;;  %v2344_v17 = vld [vmem:[#allocation5 + $0x210] ss:$12 sps:$4 sm:$0xff]  }
  0x66   :  { %1141 = vmatprep.subr.bf16.mxu0 %v2286_v15  ;;  %v2401_v15 = vld [vmem:[#allocation5 + $0x230] ss:$12 sps:$4 sm:$0xff]   ;;  %v2351_v18 = vld [vmem:[#allocation5 + $0x22c] ss:$12 sps:$4 sm:$0xff]   ;;  %v2406_v20 = vld [vmem:[#allocation5 + $0x308] ss:$12 sps:$4 sm:$0xff]  }
  0x67   :  { %2090 = vmatpush3.bf16.msra.mxu1 %v2348_v37  ;;  %v2410_v21 = vld [vmem:[#allocation5 + $0x3e0] ss:$12 sps:$4 sm:$0xff]   ;;  %v2415_v25 = vld [vmem:[#allocation5 + $0x3f8] ss:$12 sps:$4 sm:$0xff]   ;;  %v2420_v29 = vld [vmem:[#allocation5 + $0x410] ss:$12 sps:$4 sm:$0xff]  }
  0x68   :  { %2091 = vmatprep.subr.bf16.mxu1 %v2352_v38  ;;  %v2411_v24 = vld [vmem:[#allocation5 + $0x320] ss:$12 sps:$4 sm:$0xff]   ;;  %v2416_v28 = vld [vmem:[#allocation5 + $0x338] ss:$12 sps:$4 sm:$0xff]   ;;  %v2425_v33 = vld [vmem:[#allocation5 + $0x428] ss:$12 sps:$4 sm:$0xff]  }
  0x69   :  { %1142 = vmatpush1.bf16.msra.mxu0 %v2288_v16  ;;  %v2405_v16 = vld [vmem:[#allocation5 + $0x3c8] ss:$12 sps:$4 sm:$0xff]   ;;  %v2364_v34 = vld [vmem:[#allocation5 + $0x270] ss:$12 sps:$4 sm:$0xff]   ;;  %v2430_v37 = vld [vmem:[#allocation5 + $0x440] ss:$12 sps:$4 sm:$0xff]  }
  0x6a   :  { %1143 = vmatprep.subr.bf16.mxu0 %v2289_v19  ;;  %v2725_v19 = vld [vmem:[#allocation2 + $0x8] ss:$28 sps:$4 sm:$0xff]   ;;  %v2366_v31 = vld [vmem:[#allocation5 + $0x274] ss:$12 sps:$4 sm:$0xff]   ;;  %v2444_v38 = vld [vmem:[#allocation2 + $0x14] ss:$28 sps:$4 sm:$0xff]  }
  0x6b   :  { %2092 = vmatpush3.bf16.msra.mxu1 %v2353_v41  ;;  %v2431_v41 = vld [vmem:[#allocation5 + $0x380] ss:$12 sps:$4 sm:$0xff]   ;;  %vm1123_vm0 = vcmask 130048   ;;  %vm2632_vm1 = vmmov 0   ;;  %s2634_s9 = smov [#allocation10]  }
  0x6c   :  { %2093 = vmatprep.subr.bf16.mxu1 %v2357_v42  ;;  %v2435_v42 = vld [vmem:[#allocation5 + $0x458] ss:$12 sps:$4 sm:$0xff]   ;;  %s1875_s10 = sshll.u32 %s2634_s9, 4  ;;  %s1876_s10 = int_to_ptr.vmem [resolvable:$true] %s1875_s10 }
  0x6d   :  { %1144 = vmatpush1.bf16.msra.mxu0 %v2291_v22  ;;  %v2349_v22 = vld [vmem:[#allocation5 + $0x228] ss:$12 sps:$4 sm:$0xff]   ;;  %p2596_p5 = scmp.lt.s32.totalorder %s1876_s10, %s1876_s10 }
  0x6e   :  { %1145 = vmatprep.subr.bf16.mxu0 %v2292_v23  ;;  %v2356_v23 = vld [vmem:[#allocation5 + $0x244] ss:$12 sps:$4 sm:$0xff]  }
  0x6f   :  { %2094 = vmatpush3.bf16.msra.mxu1 %v2358_v45  ;;  %v2436_v45 = vld [vmem:[#allocation5 + $0x398] ss:$12 sps:$4 sm:$0xff]  }
  0x70   :  { %2101 = vmatprep.subr.bf16.mxu1 %v2362_v46  ;;  %v2440_v46 = vld [vmem:[#allocation5 + $0x470] ss:$12 sps:$4 sm:$0xff]  }
  0x71   :  { %1146 = vmatpush1.bf16.msra.mxu0 %v2294_v26  ;;  %v2354_v26 = vld [vmem:[#allocation5 + $0x240] ss:$12 sps:$4 sm:$0xff]  }
  0x72   :  { %1147 = vmatprep.subr.bf16.mxu0 %v2295_v27  ;;  %1332 = vmatmul.mubr.bf16.vlgmr.msra.gmra.mrb[0].mxu1 %v2313_v50  ;;  %v2361_v27 = vld [vmem:[#allocation5 + $0x25c] ss:$12 sps:$4 sm:$0xff]  }
  0x73   :  { %2102 = vmatpush3.bf16.msra.mxu1 %v2363_v49  ;;  %1372 = vmatprep.mubr.bf16.mxu1 %v2396_v5  ;;  %v2384_v49 = vld [vmem:[#allocation5 + $0x2d0] ss:$12 sps:$4 sm:$0xff]  }
  0x74   :  { %2103 = vmatprep.subr.bf16.mxu1 %v2367_v51  ;;  %v2391_v51 = vld [vmem:[#allocation5 + $0x2ec] ss:$12 sps:$4 sm:$0xff]  }
  0x75   :  { %1148 = vmatpush1.bf16.msra.mxu0 %v2297_v30  ;;  %v2359_v30 = vld [vmem:[#allocation5 + $0x258] ss:$12 sps:$4 sm:$0xff]  }
  0x76   :  { %1149 = vmatprep.subr.bf16.mxu0 %v2298_v32  ;;  %v2421_v32 = vld [vmem:[#allocation5 + $0x350] ss:$12 sps:$4 sm:$0xff]  }
  0x77   :  { %2104 = vmatpush3.bf16.msra.mxu1 %v2368_v54  ;;  %v2389_v54 = vld [vmem:[#allocation5 + $0x2e8] ss:$12 sps:$4 sm:$0xff]  }
  0x78   :  { %2105 = vmatprep.subr.bf16.mxu1 %v2372_v55  ;;  %v2399_v55 = vld [vmem:[#allocation5 + $0x304] ss:$12 sps:$4 sm:$0xff]  }
  0x79   :  { %1150 = vmatpush1.bf16.msra.mxu0 %v2300_v35  ;;  %v2371_v35 = vld [vmem:[#allocation5 + $0x28c] ss:$12 sps:$4 sm:$0xff]  }
  0x7a   :  { %1151 = vmatprep.subr.bf16.mxu0 %v2301_v36  ;;  %v2426_v36 = vld [vmem:[#allocation5 + $0x368] ss:$12 sps:$4 sm:$0xff]  }
  0x7b   :  { %2106 = vmatpush3.bf16.msra.mxu1 %v2373_v58  ;;  %v2404_v58 = vld [vmem:[#allocation5 + $0x31c] ss:$12 sps:$4 sm:$0xff]  }
  0x7c   :  { %2107 = vmatprep.subr.bf16.mxu1 %v2377_v59  ;;  %v2734_v59 = vld [vmem:[#allocation2 + $0x18] ss:$28 sps:$4 sm:$0xff]  }
  0x7d   :  { %1152 = vmatpush1.bf16.msra.mxu0 %v2303_v39  ;;  %v2369_v39 = vld [vmem:[#allocation5 + $0x288] ss:$12 sps:$4 sm:$0xff]  }
  0x7e   :  { %1153 = vmatprep.subr.bf16.mxu0 %v2304_v40  ;;  %v2376_v40 = vld [vmem:[#allocation5 + $0x2a4] ss:$12 sps:$4 sm:$0xff]  }
  0x7f   :  { %2108 = vmatpush3.bf16.msra.mxu1 %v2378_v62  ;;  %v2407_v62 = vld [vmem:[#allocation5 + $0x330] ss:$12 sps:$4 sm:$0xff]  }
  0x80   :  { %2109 = vmatprep.subr.bf16.mxu1 %v2382_v63  ;;  %v2414_v63 = vld [vmem:[#allocation5 + $0x34c] ss:$12 sps:$4 sm:$0xff]  }
  0x81   :  { %1154 = vmatpush1.bf16.msra.mxu0 %v2306_v43  ;;  %v2374_v43 = vld [vmem:[#allocation5 + $0x2a0] ss:$12 sps:$4 sm:$0xff]  }
  0x82   :  { %1155 = vmatprep.subr.bf16.mxu0 %v2307_v44  ;;  %v2381_v44 = vld [vmem:[#allocation5 + $0x2bc] ss:$12 sps:$4 sm:$0xff]  }
  0x83   :  { %2110 = vmatpush3.bf16.msra.mxu1 %v2383_v3  ;;  %v2424_v3 = vld [vmem:[#allocation5 + $0x37c] ss:$12 sps:$4 sm:$0xff]  }
  0x84   :  { %2111 = vmatprep.subr.bf16.mxu1 %v2387_v4  ;;  %v2422_v4 = vld [vmem:[#allocation5 + $0x378] ss:$12 sps:$4 sm:$0xff]  }
  0x85   :  { %1156 = vmatpush1.bf16.msra.mxu0 %v2309_v47  ;;  %v2379_v47 = vld [vmem:[#allocation5 + $0x2b8] ss:$12 sps:$4 sm:$0xff]  }
  0x86   :  { %1157 = vmatprep.subr.bf16.mxu0 %v2310_v48  ;;  %v2386_v48 = vld [vmem:[#allocation5 + $0x2d4] ss:$12 sps:$4 sm:$0xff]  }
  0x87   :  { %2112 = vmatpush3.bf16.msra.mxu1 %v2388_v7  ;;  %v2434_v7 = vld [vmem:[#allocation5 + $0x3ac] ss:$12 sps:$4 sm:$0xff]  }
  0x88   :  { %2113 = vmatprep.subr.bf16.mxu1 %v2392_v8  ;;  %v2432_v8 = vld [vmem:[#allocation5 + $0x3a8] ss:$12 sps:$4 sm:$0xff]  }
  0x89   :  { %1158 = vmatpush1.bf16.msra.mxu0 %v2312_v52  ;;  %v2728_v52 = vld [vmem:[#allocation2 + $0x10] ss:$28 sps:$4 sm:$0xff]  }
  0x8a   :  { %1170 = vmatprep.subr.bf16.mxu0 %v2318_v53  ;;  %v2451_v53 = vld [vmem:[#allocation5 + $0x488] ss:$12 sps:$4 sm:$0xff]  }
  0x8b   :  { %2114 = vmatpush3.bf16.msra.mxu1 %v2393_v11  ;;  %v2447_v11 = vld [vmem:[#allocation5 + $0x3dc] ss:$12 sps:$4 sm:$0xff]  }
  0x8c   :  { %1160 = vmatmul.mubr.bf16.vlgmr.msra.gmra.mrb[0].mxu0 %v2313_v50  ;;  %2115 = vmatprep.subr.bf16.mxu1 %v2400_v12  ;;  %v2441_v50 = vld [vmem:[#allocation5 + $0x3b0] ss:$12 sps:$4 sm:$0xff]   ;;  %v2445_v12 = vld [vmem:[#allocation5 + $0x3d8] ss:$12 sps:$4 sm:$0xff]  }
  0x8d   :  { %1171 = vmatpush1.bf16.msra.mxu0 %v2316_v56  ;;  %1202 = vmatprep.mubr.bf16.mxu0 %v2396_v5  ;;  %v2631_v56 = vmov 0.0   ;;  %v2429_v5 = vld [vmem:[#allocation5 + $0x394] ss:$12 sps:$4 sm:$0xff]  }
  0x8e   :  { %1172 = vmatprep.subr.bf16.mxu0 %v2321_v57  ;;  %v2397_v57 = vld [vmem:[#allocation5 + $0x300] ss:$12 sps:$4 sm:$0xff]  }
  0x8f   :  { %2116 = vmatpush3.bf16.msra.mxu1 %v2401_v15  ;;  %v2454_v15 = vld [vmem:[#allocation5 + $0x40c] ss:$12 sps:$4 sm:$0xff]  }
  0x90   :  { %2123 = vmatprep.subr.bf16.mxu1 %v2405_v16  ;;  %v2452_v16 = vld [vmem:[#allocation5 + $0x408] ss:$12 sps:$4 sm:$0xff]  }
  0x91   :  { %1173 = vmatpush1.bf16.msra.mxu0 %v2319_v60  ;;  %v2402_v60 = vld [vmem:[#allocation5 + $0x318] ss:$12 sps:$4 sm:$0xff]  }
  0x92   :  { %1174 = vmatprep.subr.bf16.mxu0 %v2326_v61  ;;  %1373 = vmatmul.mubr.bf16.vlgmr.msra.gmra.mrb[4].mxu1 %v2725_v19  ;;  %v2409_v61 = vld [vmem:[#allocation5 + $0x334] ss:$12 sps:$4 sm:$0xff]  }
  0x93   :  { %2124 = vmatpush3.bf16.msra.mxu1 %v2406_v20  ;;  %1413 = vmatprep.mubr.bf16.mxu1 %v2444_v38  ;;  %v2459_v20 = vld [vmem:[#allocation5 + $0x438] ss:$12 sps:$4 sm:$0xff]  }
  0x94   :  { %2125 = vmatprep.subr.bf16.mxu1 %v2410_v21  ;;  %v2464_v21 = vld [vmem:[#allocation5 + $0x454] ss:$12 sps:$4 sm:$0xff]  }
  0x95   :  { %1175 = vmatpush1.bf16.msra.mxu0 %v2324_v0  ;;  %v2412_v0 = vld [vmem:[#allocation5 + $0x348] ss:$12 sps:$4 sm:$0xff]  }
  0x96   :  { %1176 = vmatprep.subr.bf16.mxu0 %v2331_v1  ;;  %v2419_v1 = vld [vmem:[#allocation5 + $0x364] ss:$12 sps:$4 sm:$0xff]  }
  0x97   :  { %2126 = vmatpush3.bf16.msra.mxu1 %v2411_v24  ;;  %v2465_v24 = vld [vmem:[#allocation5 + $0x468] ss:$12 sps:$4 sm:$0xff]  }
  0x98   :  { %2127 = vmatprep.subr.bf16.mxu1 %v2415_v25  ;;  %v2470_v25 = vld [vmem:[#allocation5 + $0x484] ss:$12 sps:$4 sm:$0xff]  }
  0x99   :  { %1177 = vmatpush1.bf16.msra.mxu0 %v2329_v2  ;;  %v2417_v2 = vld [vmem:[#allocation5 + $0x360] ss:$12 sps:$4 sm:$0xff]  }
  0x9a   :  { %1178 = vmatprep.subr.bf16.mxu0 %v2336_v6  ;;  %v2427_v6 = vld [vmem:[#allocation5 + $0x390] ss:$12 sps:$4 sm:$0xff]  }
  0x9b   :  { %2128 = vmatpush3.bf16.msra.mxu1 %v2416_v28  ;;  %v2471_v28 = vld [vmem:[#allocation7 + $0x40] sm:$0xff]  }
  0x9c   :  { %2129 = vmatprep.subr.bf16.mxu1 %v2420_v29  ;;  %v2472_v29 = vld [vmem:[#allocation7] sm:$0xff]  }
  0x9d   :  { %1179 = vmatpush1.bf16.msra.mxu0 %v2334_v9  ;;  %v2439_v9 = vld [vmem:[#allocation5 + $0x3c4] ss:$12 sps:$4 sm:$0xff]  }
  0x9e   :  { %1180 = vmatprep.subr.bf16.mxu0 %v2341_v10  ;;  %v2437_v10 = vld [vmem:[#allocation5 + $0x3c0] ss:$12 sps:$4 sm:$0xff]  }
  0x9f   :  { %2130 = vmatpush3.bf16.msra.mxu1 %v2421_v32  ;;  %v2475_v32 = vld [vmem:[#allocation7 + $0x50] sm:$0xff]  }
  0xa0   :  { %2131 = vmatprep.subr.bf16.mxu1 %v2425_v33  ;;  %v2476_v33 = vld [vmem:[#allocation7 + $0x10] sm:$0xff]  }
  0xa1   :  { %1181 = vmatpush1.bf16.msra.mxu0 %v2339_v13  ;;  %v2450_v13 = vld [vmem:[#allocation5 + $0x3f4] ss:$12 sps:$4 sm:$0xff]  }
  0xa2   :  { %1182 = vmatprep.subr.bf16.mxu0 %v2346_v14  ;;  %v2448_v14 = vld [vmem:[#allocation5 + $0x3f0] ss:$12 sps:$4 sm:$0xff]  }
  0xa3   :  { %2132 = vmatpush3.bf16.msra.mxu1 %v2426_v36  ;;  %v2479_v36 = vld [vmem:[#allocation7 + $0x60] sm:$0xff]  }
  0xa4   :  { %2133 = vmatprep.subr.bf16.mxu1 %v2430_v37  ;;  %v2480_v37 = vld [vmem:[#allocation7 + $0x20] sm:$0xff]  }
  0xa5   :  { %1183 = vmatpush1.bf16.msra.mxu0 %v2344_v17  ;;  %v2458_v17 = vld [vmem:[#allocation5 + $0x424] ss:$12 sps:$4 sm:$0xff]  }
  0xa6   :  { %1184 = vmatprep.subr.bf16.mxu0 %v2351_v18  ;;  %v2456_v18 = vld [vmem:[#allocation5 + $0x420] ss:$12 sps:$4 sm:$0xff]  }
  0xa7   :  { %2134 = vmatpush3.bf16.msra.mxu1 %v2431_v41 }
  0xa8   :  { %2135 = vmatprep.subr.bf16.mxu1 %v2435_v42 }
  0xa9   :  { %1185 = vmatpush1.bf16.msra.mxu0 %v2349_v22  ;;  %v2462_v22 = vld [vmem:[#allocation5 + $0x450] ss:$12 sps:$4 sm:$0xff]  }
  0xaa   :  { %1186 = vmatprep.subr.bf16.mxu0 %v2356_v23  ;;  %v2467_v23 = vld [vmem:[#allocation5 + $0x46c] ss:$12 sps:$4 sm:$0xff]  }
  0xab   :  { %2136 = vmatpush3.bf16.msra.mxu1 %v2436_v45 }
  0xac   :  { %2137 = vmatprep.subr.bf16.mxu1 %v2440_v46  ;;  %v289_v46 = vlaneseq }
  0xad   :  { %1187 = vmatpush1.bf16.msra.mxu0 %v2354_v26  ;;  %v2468_v26 = vld [vmem:[#allocation5 + $0x480] ss:$12 sps:$4 sm:$0xff]  }
  0xae   :  { %1188 = vmatprep.subr.bf16.mxu0 %v2361_v27  ;;  %v2633_v27 = vmov 0  }
  0xaf   :  { %2138 = vmatpush3.bf16.msra.mxu1 %v2441_v50  ;;  %v2485_v50 = vld [vmem:[#allocation7 + $0x78] sm:$0xff]  }
  0xb0   :  { %2187 = vmatprep.subr.bf16.mxu1 %v2631_v56 }
  0xb1   :  { %1189 = vmatpush1.bf16.msra.mxu0 %v2359_v30  ;;  %v2473_v30 = vld [vmem:[#allocation7 + $0x48] sm:$0xff]  }
  0xb2   :  { %1190 = vmatprep.subr.bf16.mxu0 %v2366_v31  ;;  %1414 = vmatmul.mubr.bf16.vlgmr.msra.gmra.mrb[8].mxu1 %v2728_v52  ;;  %v2474_v31 = vld [vmem:[#allocation7 + $0x8] sm:$0xff]  }
  0xb3   :  { %2188 = vmatpush3.bf16.msra.mxu1 %v2451_v53  ;;  %2189 = vmatprep.mubr.msk.bf16.mxu1 %vm2632_vm1, %v2631_v56  ;;  %v287_v53 = vld [vmem:[%s2785_s2] sm:$0x7] }
  0xb4   :  { %2147 = vmatprep.subr.bf16.mxu1 %v2471_v28 }
  0xb5   :  { %1191 = vmatpush1.bf16.msra.mxu0 %v2364_v34  ;;  %v2477_v34 = vld [vmem:[#allocation7 + $0x58] sm:$0xff]  }
  0xb6   :  { %1192 = vmatprep.subr.bf16.mxu0 %v2371_v35  ;;  %v2478_v35 = vld [vmem:[#allocation7 + $0x18] sm:$0xff]  }
  0xb9   :  { %1193 = vmatpush1.bf16.msra.mxu0 %v2369_v39  ;;  %v2482_v39 = vld [vmem:[#allocation7 + $0x28] sm:$0xff]  }
  0xba   :  { %1194 = vmatprep.subr.bf16.mxu0 %v2376_v40  ;;  %2190 = vmatmul.mubr.msk.bf16.vlgmr.msra.gmra.mrb[12].mxu1 %vm1123_vm0, %v2734_v59 }
  0xbb   :  { %2148 = vmatpush3.bf16.msra.mxu1 %v2472_v29 }
  0xbc   :  { %2149 = vmatprep.subr.bf16.mxu1 %v2473_v30 }
  0xbd   :  { %1195 = vmatpush1.bf16.msra.mxu0 %v2374_v43 }
  0xbe   :  { %1196 = vmatprep.subr.bf16.mxu0 %v2381_v44 }
  0xbf   :  { %2150 = vmatpush3.bf16.msra.mxu1 %v2474_v31 }
  0xc0   :  { %2151 = vmatprep.subr.bf16.mxu1 %v2475_v32 }
  0xc1   :  { %1197 = vmatpush1.bf16.msra.mxu0 %v2379_v47  ;;  %v2483_v47 = vld [vmem:[#allocation7 + $0x70] sm:$0xff]  }
  0xc2   :  { %1198 = vmatprep.subr.bf16.mxu0 %v2386_v48  ;;  %v2484_v48 = vld [vmem:[#allocation7 + $0x30] sm:$0xff]  }
  0xc3   :  { %2152 = vmatpush3.bf16.msra.mxu1 %v2476_v33 }
  0xc4   :  { %2153 = vmatprep.subr.bf16.mxu1 %v2477_v34 }
  0xc5   :  { %1199 = vmatpush1.bf16.msra.mxu0 %v2384_v49  ;;  %v290_v49 = vshrl.u32 %v289_v46, 7  ;;  %v2496_v46 = vld [vmem:[#allocation8 + $0x8] sm:$0xff]  }
  0xc6   :  { %1200 = vmatprep.subr.bf16.mxu0 %v2391_v51  ;;  %v2486_v51 = vld [vmem:[#allocation7 + $0x38] sm:$0xff]  }
  0xc7   :  { %2154 = vmatpush3.bf16.msra.mxu1 %v2478_v35 }
  0xc8   :  { %2155 = vmatprep.subr.bf16.mxu1 %v2479_v36 }
  0xc9   :  { %1201 = vmatpush1.bf16.msra.mxu0 %v2389_v54 }
  0xca   :  { %1213 = vmatprep.subr.bf16.mxu0 %v2399_v55 }
  0xcb   :  { %2156 = vmatpush3.bf16.msra.mxu1 %v2480_v37  ;;  %v2487_v37 = vld [vmem:[#allocation7 + $0x80] sm:$0xff]  }
  0xcc   :  { %1203 = vmatmul.mubr.bf16.vlgmr.msra.gmra.mrb[0].mxu0 %v2725_v19  ;;  %v2461_v19 = vld [vmem:[#allocation5 + $0x43c] ss:$12 sps:$4 sm:$0xff]  }
  0xcd   :  { %1214 = vmatpush1.bf16.msra.mxu0 %v2397_v57  ;;  %1245 = vmatprep.mubr.bf16.mxu0 %v2444_v38  ;;  %v2481_v38 = vld [vmem:[#allocation7 + $0x68] sm:$0xff]  }
  0xce   :  { %1215 = vmatprep.subr.bf16.mxu0 %v2404_v58  ;;  %2157 = vmatprep.subr.bf16.mxu1 %v2481_v38  ;;  %v2488_v38 = vld [vmem:[#allocation7 + $0x88] sm:$0xff]  }
  0xcf   :  { %2158 = vmatpush3.bf16.msra.mxu1 %v2482_v39  ;;  %v2489_v39 = vld [vmem:[#allocation7 + $0x90] sm:$0xff]  }
  0xd0   :  { %2159 = vmatprep.subr.bf16.mxu1 %v2483_v47  ;;  %v2497_v47 = vld [vmem:[#allocation8 + $0x10] sm:$0xff]  }
  0xd1   :  { %1216 = vmatpush1.bf16.msra.mxu0 %v2402_v60 }
  0xd2   :  { %1217 = vmatprep.subr.bf16.mxu0 %v2409_v61 }
  0xd3   :  { %2160 = vmatpush3.bf16.msra.mxu1 %v2484_v48  ;;  %v2498_v48 = vld [vmem:[#allocation8 + $0x18] sm:$0xff]  }
  0xd4   :  { %2161 = vmatprep.subr.bf16.mxu1 %v2485_v50  ;;  %v2500_v50 = vld [vmem:[#allocation8 + $0x28] sm:$0xff]  }
  0xd5   :  { %1218 = vmatpush1.bf16.msra.mxu0 %v2407_v62 }
  0xd6   :  { %1219 = vmatprep.subr.bf16.mxu0 %v2414_v63 }
  0xd7   :  { %2162 = vmatpush3.bf16.msra.mxu1 %v2486_v51  ;;  %v2501_v51 = vld [vmem:[#allocation8 + $0x30] sm:$0xff]  }
  0xd8   :  { %2193 = vmatprep.subr.bf16.mxu1 %v2631_v56 }
  0xd9   :  { %1220 = vmatpush1.bf16.msra.mxu0 %v2412_v0 }
  0xda   :  { %1221 = vmatprep.subr.bf16.mxu0 %v2419_v1 }
  0xdd   :  { %1222 = vmatpush1.bf16.msra.mxu0 %v2417_v2 }
  0xde   :  { %1223 = vmatprep.subr.bf16.mxu0 %v2424_v3 }
  0xe1   :  { %1224 = vmatpush1.bf16.msra.mxu0 %v2422_v4 }
  0xe2   :  { %1225 = vmatprep.subr.bf16.mxu0 %v2429_v5 }
  0xe5   :  { %1226 = vmatpush1.bf16.msra.mxu0 %v2427_v6 }
  0xe6   :  { %1227 = vmatprep.subr.bf16.mxu0 %v2434_v7 }
  0xe9   :  { %1228 = vmatpush1.bf16.msra.mxu0 %v2432_v8 }
  0xea   :  { %1229 = vmatprep.subr.bf16.mxu0 %v2439_v9 }
  0xed   :  { %1230 = vmatpush1.bf16.msra.mxu0 %v2437_v10 }
  0xee   :  { %1231 = vmatprep.subr.bf16.mxu0 %v2447_v11 }
  0xf1   :  { %1232 = vmatpush1.bf16.msra.mxu0 %v2445_v12 }
  0xf2   :  { %1233 = vmatprep.subr.bf16.mxu0 %v2450_v13 }
  0xf5   :  { %1234 = vmatpush1.bf16.msra.mxu0 %v2448_v14 }
  0xf6   :  { %1235 = vmatprep.subr.bf16.mxu0 %v2454_v15 }
  0xf9   :  { %1236 = vmatpush1.bf16.msra.mxu0 %v2452_v16 }
  0xfa   :  { %1237 = vmatprep.subr.bf16.mxu0 %v2458_v17 }
  0xfd   :  { %1238 = vmatpush1.bf16.msra.mxu0 %v2456_v18 }
  0xfe   :  { %1239 = vmatprep.subr.bf16.mxu0 %v2461_v19  ;;  %v291_v19 = vsub.s32 0, %v290_v49 }
 0x101   :  { %1240 = vmatpush1.bf16.msra.mxu0 %v2459_v20  ;;  %v295_v20 = vsub.s32 1, %v290_v49 }
 0x102   :  { %1241 = vmatprep.subr.bf16.mxu0 %v2464_v21  ;;  %v292_v21 = vrot.slane %v287_v53, %v291_v19 }
 0x105   :  { %1242 = vmatpush1.bf16.msra.mxu0 %v2462_v22  ;;  %v296_v22 = vrot.slane %v287_v53, %v295_v20 }
 0x106   :  { %1243 = vmatprep.subr.bf16.mxu0 %v2467_v23 }
 0x109   :  { %1244 = vmatpush1.bf16.msra.mxu0 %v2465_v24 }
 0x10a   :  { %1256 = vmatprep.subr.bf16.mxu0 %v2470_v25 }
 0x10c   :  { %1246 = vmatmul.mubr.bf16.vlgmr.msra.gmra.mrb[0].mxu0 %v2728_v52  ;;  %v299_v52 = vsub.s32 2, %v290_v49  ;;  %v2499_v49 = vld [vmem:[#allocation8 + $0x20] sm:$0xff]  }
 0x10d   :  { %1257 = vmatpush1.bf16.msra.mxu0 %v2468_v26  ;;  %1288 = vmatprep.mubr.bf16.mxu0 %v2633_v27 }
 0x10e   :  { %v300_v54 = vrot.slane %v287_v53, %v299_v52  ;;  %v2502_v52 = vld [vmem:[#allocation8 + $0x38] sm:$0xff]  }
 0x118   :  { %2043 = vmatmul.mubr.msk.bf16.vlgmr.msra.gmra.mrb[0].mxu0 %vm1123_vm0, %v2734_v59 }
 0x145   :  { %v2095_v40 = vpop.f32.mrb[0].mxu1 }
 0x146   :  { %v2096_v41 = vpop.f32.mrb[1].mxu1 }
 0x147   :  { %v2097_v42 = vadd.f32 %v2096_v41, %v2095_v40  ;;  %v2098_v43 = vpop.f32.mrb[2].mxu1  ;;  %v2490_v40 = vld [vmem:[#allocation7 + $0x98] sm:$0xff]   ;;  %v2491_v41 = vld [vmem:[#allocation7 + $0xa0] sm:$0xff]  }
 0x148   :  { %v2099_v44 = vpop.f32.mrb[3].mxu1 }
 0x149   :  { %v2100_v45 = vadd.f32 %v2099_v44, %v2098_v43  ;;  %v1334_v55 = vadd.f32 %v2097_v42, %v300_v54  ;;  %v2492_v42 = vld [vmem:[#allocation7 + $0xa8] sm:$0xff]   ;;  %v2493_v43 = vld [vmem:[#allocation7 + $0xb0] sm:$0xff]   ;;  %v2494_v44 = vld [vmem:[#allocation7 + $0xb8] sm:$0xff]  }
 0x14b   :  { %v1337_v59 = vadd.f32 %v2100_v45, %v300_v54  ;;  %v2495_v45 = vld [vmem:[#allocation8] sm:$0xff]  }
 0x165   :  { %v2117_v57 = vpop.f32.mrb[4].mxu1 }
 0x166   :  { %v2118_v58 = vpop.f32.mrb[5].mxu1 }
 0x167   :  { %v2119_v60 = vadd.f32 %v2118_v58, %v2117_v57  ;;  %v2120_v61 = vpop.f32.mrb[6].mxu1 }
 0x168   :  { %v2121_v62 = vpop.f32.mrb[7].mxu1 }
 0x169   :  { %v1375_v63 = vadd.f32 %v2119_v60, %v1334_v55  ;;  %v2122_v0 = vadd.f32 %v2121_v62, %v2120_v61  ;;  %v2045_v60 = vld [vmem:[%s2787_s4] ss:$0 sm:$0xff]  ;;  %s2591_s4 = scalar_lea.vmem %s1876_s10, 256 }
 0x16a   :  { %p2592_p4 = scmp.ne.s32.totalorder %s1876_s10, %s2591_s4  ;;  %p2597_p6 = scmp.lt.s32.totalorder %s2591_s4, %s2591_s4 }
 0x16b   :  { %v1378_v1 = vadd.f32 %v2122_v0, %v1337_v59 }
 0x16c   :  { %p2598_p7 = por %p2597_p6, %p2596_p5 }
 0x16e   :  { %p2599_p8 = pnand %p2598_p7, %p2592_p4 }
 0x185   :  { %v2139_v2 = vpop.f32.mrb[8].mxu1 }
 0x186   :  { %v2140_v3 = vpop.f32.mrb[9].mxu1 }
 0x187   :  { %v2141_v4 = vadd.f32 %v2140_v3, %v2139_v2  ;;  %v2142_v5 = vpop.f32.mrb[10].mxu1 }
 0x188   :  { %v2143_v6 = vpop.f32.mrb[11].mxu1 }
 0x189   :  { %v2144_v7 = vadd.f32 %v2143_v6, %v2142_v5  ;;  %v1416_v8 = vadd.f32 %v2141_v4, %v1375_v63 }
 0x18b   :  { %v1419_v9 = vadd.f32 %v2144_v7, %v1378_v1  ;;  %v2070_v7 = vld [vmem:[%s2789_s6] ss:$0 sm:$0xff] }
 0x18d   :  { %v1456_v10 = vpop.f32.mrb[12].mxu1 }
 0x18e   :  { %v1457_v11 = vadd.f32 %v1456_v10, %v1416_v8  ;;  %v2191_v12 = vpop.f32.mrb[13].mxu1 }
 0x18f   :  { %v1459_v13 = vpop.f32.mrb[14].mxu1 }
 0x190   :  { %v1465_v14 = vmax.f32 %v1457_v11, 0.0  ;;  %v1460_v15 = vadd.f32 %v1459_v13, %v1419_v9  ;;  %v2192_v16 = vpop.f32.mrb[15].mxu1 }
 0x192   :  { %v1468_v17 = vmax.f32 %v1460_v15, 0.0 }
 0x194   :  { %v1471_v18 = vpack.c.bf16 %v1468_v17, %v1465_v14 }
 0x1eb   :  { %v1290_v23 = vpop.f32.mrb[0].mxu0 }
 0x1ec   :  { %v2233_v24 = vadd.f32 %v1290_v23, %v292_v21  ;;  %v1292_v25 = vpop.f32.mrb[1].mxu0 }
 0x1ed   :  { %v2234_v26 = vadd.f32 %v1292_v25, %v296_v22  ;;  %v1294_v27 = vpop.f32.mrb[2].mxu0 }
 0x1ee   :  { %v2235_v28 = vadd.f32 %v1294_v27, %v292_v21  ;;  %v1296_v29 = vpop.f32.mrb[3].mxu0  ;;  %v1463_v31 = vmax.f32 %v2233_v24, 0.0 }
 0x1ef   :  { %v2236_v30 = vadd.f32 %v1296_v29, %v296_v22  ;;  %v1464_v33 = vmax.f32 %v2234_v26, 0.0 }
 0x1f0   :  { %v1466_v32 = vmax.f32 %v2235_v28, 0.0 }
 0x1f1   :  { %v1467_v34 = vmax.f32 %v2236_v30, 0.0 }
 0x1f2   :  { %v1469_v35 = vpack.c.bf16 %v1466_v32, %v1463_v31 }
 0x1f3   :  { %v1470_v36 = vpack.c.bf16 %v1467_v34, %v1464_v33 }
 0x1f5   :  { %1703 = vmatprep.mubr.bf16.mxu1 %v1470_v36 }
 0x1f6   :  { %1704 = vmatmul.mubr.bf16.vlgmr.msra.gmra.mrb[16].mxu1 %v1469_v35 }
 0x1f7   :  { %2194 = vmatpush3.bf16.msra.mxu1 %v2487_v37  ;;  %2209 = vmatprep.mubr.msk.bf16.mxu1 %vm2632_vm1, %v2631_v56 }
 0x1f8   :  { %2195 = vmatprep.subr.bf16.mxu1 %v2631_v56 }
 0x1fb   :  { %2196 = vmatpush3.bf16.msra.mxu1 %v2488_v38 }
 0x1fc   :  { %2197 = vmatprep.subr.bf16.mxu1 %v2631_v56 }
 0x1ff   :  { %2198 = vmatpush3.bf16.msra.mxu1 %v2489_v39 }
 0x200   :  { %2199 = vmatprep.subr.bf16.mxu1 %v2631_v56 }
 0x203   :  { %2200 = vmatpush3.bf16.msra.mxu1 %v2490_v40 }
 0x204   :  { %2201 = vmatprep.subr.bf16.mxu1 %v2631_v56 }
 0x207   :  { %2202 = vmatpush3.bf16.msra.mxu1 %v2491_v41 }
 0x208   :  { %2203 = vmatprep.subr.bf16.mxu1 %v2631_v56 }
 0x20b   :  { %2204 = vmatpush3.bf16.msra.mxu1 %v2492_v42 }
 0x20c   :  { %2205 = vmatprep.subr.bf16.mxu1 %v2631_v56 }
 0x20f   :  { %2206 = vmatpush3.bf16.msra.mxu1 %v2493_v43 }
 0x210   :  { %2207 = vmatprep.subr.bf16.mxu1 %v2631_v56 }
 0x213   :  { %2208 = vmatpush3.bf16.msra.mxu1 %v2494_v44 }
 0x214   :  { %2213 = vmatprep.subr.bf16.mxu1 %v2631_v56 }
 0x216   :  { %2210 = vmatmul.mubr.bf16.vlgmr.msra.gmra.mrb[20].mxu1 %v1471_v18 }
 0x217   :  { %2229 = vmatprep.mubr.msk.bf16.mxu1 %vm2632_vm1, %v2631_v56  ;;  %2214 = vmatpush3.bf16.msra.mxu1 %v2495_v45 }
 0x218   :  { %2215 = vmatprep.subr.bf16.mxu1 %v2631_v56 }
 0x21b   :  { %2216 = vmatpush3.bf16.msra.mxu1 %v2496_v46 }
 0x21c   :  { %2217 = vmatprep.subr.bf16.mxu1 %v2631_v56 }
 0x21f   :  { %2218 = vmatpush3.bf16.msra.mxu1 %v2497_v47 }
 0x220   :  { %2219 = vmatprep.subr.bf16.mxu1 %v2631_v56 }
 0x223   :  { %2220 = vmatpush3.bf16.msra.mxu1 %v2498_v48 }
 0x224   :  { %2221 = vmatprep.subr.bf16.mxu1 %v2631_v56 }
 0x227   :  { %2222 = vmatpush3.bf16.msra.mxu1 %v2499_v49 }
 0x228   :  { %2223 = vmatprep.subr.bf16.mxu1 %v2631_v56 }
 0x22b   :  { %2224 = vmatpush3.bf16.msra.mxu1 %v2500_v50 }
 0x22c   :  { %2225 = vmatprep.subr.bf16.mxu1 %v2631_v56 }
 0x22f   :  { %2226 = vmatpush3.bf16.msra.mxu1 %v2501_v51 }
 0x230   :  { %2227 = vmatprep.subr.bf16.mxu1 %v2631_v56 }
 0x233   :  { %2228 = vmatpush3.bf16.msra.mxu1 %v2502_v52 }
 0x2c9   :  { %v2163_v53 = vpop.f32.mrb[16].mxu1 }
 0x2ca   :  { %v2164_v54 = vpop.f32.mrb[17].mxu1 }
 0x2cb   :  { %v2165_v55 = vadd.f32 %v2164_v54, %v2163_v53  ;;  %v2166_v57 = vpop.f32.mrb[18].mxu1 }
 0x2cc   :  { %v2167_v58 = vpop.f32.mrb[19].mxu1 }
 0x2cd   :  { %v2168_v59 = vadd.f32 %v2167_v58, %v2166_v57  ;;  %v1706_v61 = vadd.f32 %v2165_v55, %v2045_v60 }
 0x2cf   :  { %v1709_v1 = vadd.f32 %v2168_v59, %v2045_v60 }
 0x2e9   :  { %v1746_v62 = vpop.f32.mrb[20].mxu1 }
 0x2ea   :  { %v1747_v63 = vadd.f32 %v1746_v62, %v1706_v61  ;;  %v2211_v0 = vpop.f32.mrb[21].mxu1 }
 0x2eb   :  { %v1749_v2 = vpop.f32.mrb[22].mxu1 }
 0x2ec   :  { %v1750_v3 = vadd.f32 %v1749_v2, %v1709_v1  ;;  %v2212_v56 = vpop.f32.mrb[23].mxu1  ;;  %v1753_v4 = vmax.f32 %v1747_v63, 0.0 }
 0x2ee   :  { %v1754_v5 = vmax.f32 %v1750_v3, 0.0 }
 0x2f0   :  { %v1755_v6 = vpack.c.bf16 %v1754_v5, %v1753_v4 }
 0x2f2   :  { %2230 = vmatmul.mubr.bf16.vlgmr.msra.gmra.mrb[24].mxu1 %v1755_v6 }
 0x3c5   :  { %v1861_v8 = vpop.f32.mrb[24].mxu1 }
 0x3c6   :  { %v1862_v9 = vadd.f32 %v2070_v7, %v1861_v8  ;;  %v2231_v10 = vpop.f32.mrb[25].mxu1 }
 0x3c7   :  { %v1864_v11 = vpop.f32.mrb[26].mxu1 }
 0x3c8   :  { %1868 = vst [vmem:[#allocation10] sm:$0xff] %v1862_v9  ;;  %v1865_v12 = vadd.f32 %v2070_v7, %v1864_v11  ;;  %v2232_v13 = vpop.f32.mrb[27].mxu1 }
 0x3ca   :  { %1869 = vst [vmem:[#allocation10 + $0x8] sm:$0xff] %v1865_v12 }
 0x3cb   :  { %2602 = shalt.err (!%p2599_p8)
}
 0x3cc   :  { %s2603_s12 = scalar_lea.hbm %s2790_s7, 256 }
 0x3cd   :  { %p2604_p9 = scmp.ne.s32.totalorder %s2790_s7, %s2603_s12  ;;  %p2607_p10 = scmp.lt.u32.totalorder %s2603_s12, %s2790_s7 }
 0x3cf   :  { %p2609_p11 = pnand %p2607_p10, %p2604_p9 }
 0x3d1   :  { %2612 = shalt.err (!%p2609_p11)
}
 0x3d2   :  { %s2635_s16 = smov 128   ;;  %s2636_s17 = smov 8  }
 0x3d3   :  { %1881 = dma.vmem_to_hbm [thread:$0]  %s1876_s10, 256, %s2790_s7, [#allocation4], %s2635_s16, %s2635_s16, %s2636_s17  }
 0x3d4   :  { %2619 = dma.done.wait [#allocation4], 256  }
 0x3d5   :  { %2620 = vsyncadd [#allocation4], 4294967040 }
 0x3d6   :  { %1885 = vsyncpa [#allocation3], 1 }
 0x3d7   :  { %1886 = vsyncpa [#allocation6], 1 }
 0x3d8   :  { %1887 = vsyncpa [#allocation9], 1 }
 0x3d9   :  { %1888 = vsyncpa [#allocation4], 1 }

</bundles_post_ra>
